<compile_context>
chip_gen: v6e
topology: v6e:2x2x1
jax: 0.10.0
libtpu: 0.0.40
codegen_flags: <defaults>
</compile_context>

<pallas_src>
import jax
import jax.numpy as jnp
from jax import lax
from jax.experimental import pallas as pl
from jax.experimental.pallas import tpu as pltpu

GAMMA = 2.0          # focal-loss gamma (SA-SSD default) -- statically 2 => pt*pt
ALPHA = 0.25         # focal-loss alpha (SA-SSD default)
LANES = 128
CHUNK_ROWS = 16            # (16,128) per chunk: 2 vregs/operand, no spills
LOSS_BLOCK_ROWS = 2048     # (2048,128): 1 MiB f32 preds + 1 MiB int32 labels
RESCORE_WIDTH = 1024       # lane-dense output slab for the sigmoid kernel
RESCORE_BLOCK_ROWS = 512   # (512,1024) f32 = 2 MiB / block
RESCORE_MIN_ELEMS = 65536  # below this, plain XLA sigmoid is faster


# ----------------------------------------------------------------------------
# Kernel 1: weighted sigmoid focal classification loss (AlignmentHead.loss)
# ----------------------------------------------------------------------------
def _make_focal_loss_kernel(block_rows, rows):
    """block_rows is a multiple of CHUNK_ROWS; rows = valid rows of the input."""
    n_chunks = block_rows // CHUNK_ROWS
    ragged = (rows % block_rows) != 0   # last grid step reads OOB rows -> mask

    def kernel(preds_ref, labels_ref, loss_ref, pos_ref):
        @pl.when(pl.program_id(0) == 0)
        def _():
            loss_ref[...] = jnp.zeros_like(loss_ref)
            pos_ref[...] = jnp.zeros_like(pos_ref)

        if ragged:
            blk_base = pl.program_id(0) * block_rows
            # hoisted: JAX does not CSE broadcast_in_dim inside loops
            row_iota = lax.broadcasted_iota(jnp.int32, (CHUNK_ROWS, LANES), 0)

        def body(j, carry):
            acc_loss, acc_pos = carry
            off = pl.multiple_of(j * CHUNK_ROWS, CHUNK_ROWS)
            x = preds_ref[pl.ds(off, CHUNK_ROWS), :].astype(jnp.float32)
            lab = labels_ref[pl.ds(off, CHUNK_ROWS), :]
            if ragged:
                # neutralize garbage rows of the (possibly) partial last block
                valid = (row_iota + (blk_base + off)) < rows
                x = jnp.where(valid, x, 0.0)
                lab = jnp.where(valid, lab, -1)

            pos_b = lab > 0
            care_b = lab >= 0
            t = pos_b.astype(jnp.float32)
            # alpha weight with cared / ignored mask folded in (cls_weights)
            alpha_c = jnp.where(pos_b, ALPHA, jnp.where(care_b, 1.0 - ALPHA, 0.0))

            # shared exp(-|x|) feeds the sigmoid and the stable BCE-with-logits
            e = jnp.exp(-jnp.abs(x))
            d = 1.0 + e
            r = pl.reciprocal(d, approx=True)
            r = r * (2.0 - d * r)                     # one Newton step (~2^-24)
            sig = jnp.where(x >= 0.0, 1.0, e) * r
            pt = jnp.where(pos_b, 1.0 - sig, sig)     # == (1-sig)*t + sig*(1-t)
            bce = jnp.maximum(x, 0.0) - jnp.where(pos_b, x, 0.0) + jnp.log1p(e)
            term = bce * (alpha_c * (pt * pt))        # gamma == 2 -> pt*pt
            return acc_loss + term, acc_pos + t

        zeros = jnp.zeros((CHUNK_ROWS, LANES), jnp.float32)
        acc_loss, acc_pos = lax.fori_loop(0, n_chunks, body, (zeros, zeros))
        loss_ref[...] += acc_loss
        pos_ref[...] += acc_pos

    return kernel


def _reference_cls_loss(cls_preds, labels, cfg_weight, batch_size):
    """Plain-JAX weighted sigmoid focal loss (also the tiny-input fallback)."""
    x = cls_preds.reshape(-1).astype(jnp.float32)
    lab = labels.reshape(-1).astype(jnp.int32)
    pos = (lab > 0).astype(jnp.float32)
    neg = (lab == 0).astype(jnp.float32)
    cared = (lab >= 0).astype(jnp.float32)
    w = (pos + neg) / jnp.maximum(pos.sum(), 1.0)
    t = lab.astype(jnp.float32) * cared
    sig = jax.nn.sigmoid(x)
    pt = (1.0 - sig) * t + sig * (1.0 - t)
    fw = (ALPHA * t + (1.0 - ALPHA) * (1.0 - t)) * (pt ** GAMMA)
    bce = jnp.maximum(x, 0.0) - x * t + jnp.log1p(jnp.exp(-jnp.abs(x)))
    return jnp.sum(bce * fw * w) * cfg_weight / batch_size


def alignment_head_cls_loss(cls_preds, labels, cfg_weight, batch_size):
    """cls_preds: (N, 1) float logits; labels: (N, 1) int in {-1, 0, 1}.

    Returns scalar: sum(focal * cls_weights) / clamp(num_pos, 1) * cfg_weight / batch.
    """
    preds = cls_preds.reshape(-1)
    if preds.dtype not in (jnp.float32, jnp.bfloat16):
        preds = preds.astype(jnp.float32)
    labs = labels.reshape(-1)
    if labs.dtype != jnp.int32:
        labs = labs.astype(jnp.int32)     # int32 is the native (no-copy) path

    n = preds.shape[0]
    rows = -(-n // LANES)
    if rows < CHUNK_ROWS:
        # tiny input: a pallas_call is pure overhead; XLA fuses this in one pass
        return _reference_cls_loss(preds, labs, cfg_weight, batch_size)

    pad = rows * LANES - n
    if pad:
        # only when N % 128 != 0 (needed for the 2-D reshape); aligned anchor
        # counts stream straight from HBM with no extra copy.
        preds = jnp.pad(preds, (0, pad))                     # logit 0
        labs = jnp.pad(labs, (0, pad), constant_values=-1)   # ignore label
    preds2d = preds.reshape(rows, LANES)
    labs2d = labs.reshape(rows, LANES)

    block_rows = min(LOSS_BLOCK_ROWS, (rows // CHUNK_ROWS) * CHUNK_ROWS)
    grid = (pl.cdiv(rows, block_rows),)   # ragged last block masked in-kernel

    loss_part, pos_part = pl.pallas_call(
        _make_focal_loss_kernel(block_rows, rows),
        out_shape=(jax.ShapeDtypeStruct((CHUNK_ROWS, LANES), jnp.float32),
                   jax.ShapeDtypeStruct((CHUNK_ROWS, LANES), jnp.float32)),
        grid=grid,
        in_specs=[pl.BlockSpec((block_rows, LANES), lambda i: (i, 0)),
                  pl.BlockSpec((block_rows, LANES), lambda i: (i, 0))],
        out_specs=(pl.BlockSpec((CHUNK_ROWS, LANES), lambda i: (0, 0)),
                   pl.BlockSpec((CHUNK_ROWS, LANES), lambda i: (0, 0))),
        compiler_params=pltpu.CompilerParams(
            dimension_semantics=("arbitrary",)),   # reduction axis, resident acc
    )(preds2d, labs2d)

    loss_sum = jnp.sum(loss_part)
    pos_sum = jnp.sum(pos_part)
    cls_losses = loss_sum / jnp.maximum(pos_sum, 1.0)   # avg_factor = 1.0
    return cls_losses * cfg_weight / batch_size


# ----------------------------------------------------------------------------
# Kernel 2: sigmoid score rescoring (AlignmentHead.get_rescore_bboxes hot path)
# ----------------------------------------------------------------------------
def _sigmoid_kernel(x_ref, o_ref):
    o_ref[...] = jax.nn.sigmoid(x_ref[...].astype(jnp.float32)).astype(o_ref.dtype)


def alignment_head_rescore_scores(cls_scores):
    """cls_scores: (B, A) logits -> sigmoid scores, same shape/dtype.

    TODO(synk): score_thr selection, rotated BEV NMS and the IoU-weighted box
    merge are data-dependent / dynamic-shape; left to host-side post-processing.
    """
    shape = cls_scores.shape
    n = cls_scores.size
    if n < RESCORE_MIN_ELEMS or (n % LANES) != 0:
        # tiny or lane-unaligned: let XLA handle (and fuse) it; the pad + tail
        # slice round-trips around a pallas_call would cost more HBM traffic.
        return jax.nn.sigmoid(cls_scores)

    width = LANES
    for w in (RESCORE_WIDTH, 512, 256):
        if n % w == 0:
            width = w
            break
    rows = n // width                       # exact: no pad, no tail slice
    sub = {4: 8, 2: 16, 1: 32}.get(jnp.dtype(cls_scores.dtype).itemsize, 8)
    block_rows = min(RESCORE_BLOCK_ROWS, (rows // sub) * sub)
    x2d = cls_scores.reshape(rows, width)

    out2d = pl.pallas_call(
        _sigmoid_kernel,
        out_shape=jax.ShapeDtypeStruct((rows, width), cls_scores.dtype),
        grid=(pl.cdiv(rows, block_rows),),  # ragged last block: OOB stores dropped
        in_specs=[pl.BlockSpec((block_rows, width), lambda i: (i, 0))],
        out_specs=pl.BlockSpec((block_rows, width), lambda i: (i, 0)),
        compiler_params=pltpu.CompilerParams(
            dimension_semantics=("parallel",)),
    )(x2d)
    return out2d.reshape(shape)


# ----------------------------------------------------------------------------
# Self-test
# ----------------------------------------------------------------------------
if __name__ == "__main__":
    key = jax.random.PRNGKey(0)
    k = jax.random.split(key, 10)
    batch_size = 2
    cfg_weight = 1.0

    # tiny: below the Pallas threshold -> plain fused XLA path
    preds_t = jax.random.normal(k[0], (1000, 1), dtype=jnp.float32)
    labels_t = jax.random.randint(k[1], (1000, 1), -1, 2, dtype=jnp.int32)
    loss_t = alignment_head_cls_loss(preds_t, labels_t, cfg_weight, batch_size)

    # small: N % 128 != 0 (pad for reshape) + ragged last block (row mask):
    # rows=17, block_rows=16, grid=(2,)
    n_small = 2088
    preds_s = jax.random.normal(k[2], (n_small, 1), dtype=jnp.float32)
    labels_s = jax.random.randint(k[3], (n_small, 1), -1, 2, dtype=jnp.int32)
    loss_s = alignment_head_cls_loss(preds_s, labels_s, cfg_weight, batch_size)

    # medium, 128-aligned: no wrapper pad, rows=4096, block_rows=2048, grid=(2,)
    n_med = 524288
    preds_m = jax.random.normal(k[4], (n_med, 1), dtype=jnp.float32)
    labels_m = jax.random.randint(k[5], (n_med, 1), -1, 2, dtype=jnp.int32)
    loss_m = alignment_head_cls_loss(preds_m, labels_m, cfg_weight, batch_size)

    # large, ragged: rows=4688, block_rows=2048, grid=(3,), masked tail block
    n_big = 600000
    preds_b = jax.random.normal(k[6], (n_big, 1), dtype=jnp.float32)
    labels_b = jax.random.randint(k[7], (n_big, 1), -1, 2, dtype=jnp.int32)
    loss_b = alignment_head_cls_loss(preds_b, labels_b, cfg_weight, batch_size)

    # rescore: big tensor -> Pallas ((640,1024) blocks of (512,1024), ragged
    # grid); small tensor -> XLA fallback
    scores_big = jax.random.normal(k[8], (batch_size, 327680), dtype=jnp.float32)
    scores_small = jax.random.normal(k[9], (batch_size, 500), dtype=jnp.float32)
    resc_big = alignment_head_rescore_scores(scores_big)
    resc_small = alignment_head_rescore_scores(scores_small)

    jax.block_until_ready((loss_t, loss_s, loss_m, loss_b, resc_big, resc_small))

    cases = [(loss_t, preds_t, labels_t), (loss_s, preds_s, labels_s),
             (loss_m, preds_m, labels_m), (loss_b, preds_b, labels_b)]
    for got, p, l in cases:
        ref = _reference_cls_loss(p, l, cfg_weight, batch_size)
        assert jnp.allclose(got, ref, rtol=2e-4, atol=1e-6), (got, ref)
    assert jnp.allclose(resc_big, jax.nn.sigmoid(scores_big), rtol=1e-5, atol=1e-6)
    assert jnp.allclose(resc_small, jax.nn.sigmoid(scores_small), rtol=1e-5, atol=1e-6)

    print("KERNEL_OK")
</pallas_src>

<mosaic_0001>
module attributes {stable_mosaic.version = 11 : i64} {
  func.func @kernel(%arg0: i32, %arg1: memref<16x128xf32, #tpu.memory_space<vmem>>, %arg2: memref<16x128xi32, #tpu.memory_space<vmem>>, %arg3: memref<16x128xf32, #tpu.memory_space<vmem>>, %arg4: memref<16x128xf32, #tpu.memory_space<vmem>>) attributes {dimension_semantics = [#tpu.dimension_semantics<arbitrary>], iteration_bounds = array<i64: 2>, scalar_prefetch = 0 : i64, scratch_operands = 0 : i64, tpu.core_type = #tpu.core_type<tc>, window_params = [{transform_indices = @transform_0, window_bounds = array<i64: 16, 128>}, {transform_indices = @transform_1, window_bounds = array<i64: 16, 128>}, {pipeline_mode = #tpu.pipeline_mode<synchronous>, transform_indices = @transform_2, window_bounds = array<i64: 16, 128>}, {pipeline_mode = #tpu.pipeline_mode<synchronous>, transform_indices = @transform_3, window_bounds = array<i64: 16, 128>}]} {
    %c0_i32 = arith.constant 0 : i32
    %0 = arith.cmpi eq, %arg0, %c0_i32 : i32
    %1 = arith.extui %0 : i1 to i32
    %c0_i32_0 = arith.constant 0 : i32
    %2 = arith.cmpi ne, %1, %c0_i32_0 : i32
    scf.if %2 {
      %cst_26 = arith.constant 0.000000e+00 : f32
      %69 = vector.broadcast %cst_26 : f32 to vector<16x128xf32>
      %c0_27 = arith.constant 0 : index
      %c0_28 = arith.constant 0 : index
      %70 = vector.load %arg3[%c0_27, %c0_28] : memref<16x128xf32, #tpu.memory_space<vmem>>, vector<16x128xf32>
      tpu.vector_store %arg3[%c0_27, %c0_28], %69 {strides = array<i32>} : memref<16x128xf32, #tpu.memory_space<vmem>>, vector<16x128xf32>,
      %cst_29 = arith.constant 0.000000e+00 : f32
      %71 = vector.broadcast %cst_29 : f32 to vector<16x128xf32>
      %c0_30 = arith.constant 0 : index
      %c0_31 = arith.constant 0 : index
      %72 = vector.load %arg4[%c0_30, %c0_31] : memref<16x128xf32, #tpu.memory_space<vmem>>, vector<16x128xf32>
      tpu.vector_store %arg4[%c0_30, %c0_31], %71 {strides = array<i32>} : memref<16x128xf32, #tpu.memory_space<vmem>>, vector<16x128xf32>,
    } else {
    }
    %c16_i32 = arith.constant 16 : i32
    %3 = arith.muli %arg0, %c16_i32 : i32
    %4 = tpu.iota {dimensions = array<i32: 0>} : vector<16x128xi32>
    %cst = arith.constant 0.000000e+00 : f32
    %5 = vector.broadcast %cst : f32 to vector<16x128xf32>
    %c0_i32_1 = arith.constant 0 : i32
    %c16_i32_2 = arith.constant 16 : i32
    %6 = arith.muli %c0_i32_1, %c16_i32_2 : i32
    %7 = tpu.assume_multiple %6, 16 : i32
    %8 = arith.index_cast %7 : i32 to index
    %c0 = arith.constant 0 : index
    %9 = vector.load %arg1[%8, %c0] : memref<16x128xf32, #tpu.memory_space<vmem>>, vector<16x128xf32>
    %10 = arith.index_cast %7 : i32 to index
    %c0_3 = arith.constant 0 : index
    %11 = vector.load %arg2[%10, %c0_3] : memref<16x128xi32, #tpu.memory_space<vmem>>, vector<16x128xi32>
    %12 = arith.addi %3, %7 : i32
    %13 = vector.broadcast %12 : i32 to vector<16x128xi32>
    %14 = arith.addi %4, %13 : vector<16x128xi32>
    %c17_i32 = arith.constant 17 : i32
    %15 = vector.broadcast %c17_i32 : i32 to vector<16x128xi32>
    %16 = arith.cmpi slt, %14, %15 : vector<16x128xi32>
    %cst_4 = arith.constant 0.000000e+00 : f32
    %17 = vector.broadcast %cst_4 : f32 to vector<16x128xf32>
    %18 = arith.select %16, %9, %17 : vector<16x128xi1>, vector<16x128xf32>
    %c-1_i32 = arith.constant -1 : i32
    %19 = vector.broadcast %c-1_i32 : i32 to vector<16x128xi32>
    %20 = arith.select %16, %11, %19 : vector<16x128xi1>, vector<16x128xi32>
    %c0_i32_5 = arith.constant 0 : i32
    %21 = vector.broadcast %c0_i32_5 : i32 to vector<16x128xi32>
    %22 = arith.cmpi sgt, %20, %21 : vector<16x128xi32>
    %c0_i32_6 = arith.constant 0 : i32
    %23 = vector.broadcast %c0_i32_6 : i32 to vector<16x128xi32>
    %24 = arith.cmpi sge, %20, %23 : vector<16x128xi32>
    %25 = arith.extui %22 : vector<16x128xi1> to vector<16x128xi32>
    %26 = arith.sitofp %25 : vector<16x128xi32> to vector<16x128xf32>
    %cst_7 = arith.constant 7.500000e-01 : f32
    %cst_8 = arith.constant 0.000000e+00 : f32
    %27 = vector.broadcast %cst_7 : f32 to vector<16x128xf32>
    %28 = vector.broadcast %cst_8 : f32 to vector<16x128xf32>
    %29 = arith.select %24, %27, %28 : vector<16x128xi1>, vector<16x128xf32>
    %cst_9 = arith.constant 2.500000e-01 : f32
    %30 = vector.broadcast %cst_9 : f32 to vector<16x128xf32>
    %31 = arith.select %22, %30, %29 : vector<16x128xi1>, vector<16x128xf32>
    %32 = math.absf %18 : vector<16x128xf32>
    %cst_10 = arith.constant 0.000000e+00 : f32
    %33 = vector.broadcast %cst_10 : f32 to vector<16x128xf32>
    %34 = arith.subf %33, %32 : vector<16x128xf32>
    %35 = math.exp %34 : vector<16x128xf32>
    %cst_11 = arith.constant 1.000000e+00 : f32
    %36 = vector.broadcast %cst_11 : f32 to vector<16x128xf32>
    %37 = arith.addf %36, %35 : vector<16x128xf32>
    %38 = tpu.reciprocal %37 {approx = true} : vector<16x128xf32> -> vector<16x128xf32>
    %39 = arith.mulf %37, %38 : vector<16x128xf32>
    %cst_12 = arith.constant 2.000000e+00 : f32
    %40 = vector.broadcast %cst_12 : f32 to vector<16x128xf32>
    %41 = arith.subf %40, %39 : vector<16x128xf32>
    %42 = arith.mulf %38, %41 : vector<16x128xf32>
    %cst_13 = arith.constant 0.000000e+00 : f32
    %43 = vector.broadcast %cst_13 : f32 to vector<16x128xf32>
    %44 = arith.cmpf oge, %18, %43 : vector<16x128xf32>
    %cst_14 = arith.constant 1.000000e+00 : f32
    %45 = vector.broadcast %cst_14 : f32 to vector<16x128xf32>
    %46 = arith.select %44, %45, %35 : vector<16x128xi1>, vector<16x128xf32>
    %47 = arith.mulf %46, %42 : vector<16x128xf32>
    %cst_15 = arith.constant 1.000000e+00 : f32
    %48 = vector.broadcast %cst_15 : f32 to vector<16x128xf32>
    %49 = arith.subf %48, %47 : vector<16x128xf32>
    %50 = arith.select %22, %49, %47 : vector<16x128xi1>, vector<16x128xf32>
    %cst_16 = arith.constant 0.000000e+00 : f32
    %51 = vector.broadcast %cst_16 : f32 to vector<16x128xf32>
    %52 = arith.maximumf %18, %51 : vector<16x128xf32>
    %cst_17 = arith.constant 0.000000e+00 : f32
    %53 = vector.broadcast %cst_17 : f32 to vector<16x128xf32>
    %54 = arith.select %22, %18, %53 : vector<16x128xi1>, vector<16x128xf32>
    %55 = arith.subf %52, %54 : vector<16x128xf32>
    %56 = math.log1p %35 : vector<16x128xf32>
    %57 = arith.addf %55, %56 : vector<16x128xf32>
    %58 = arith.mulf %50, %50 : vector<16x128xf32>
    %59 = arith.mulf %31, %58 : vector<16x128xf32>
    %60 = arith.mulf %57, %59 : vector<16x128xf32>
    %61 = arith.addf %5, %60 : vector<16x128xf32>
    %62 = arith.addf %5, %26 : vector<16x128xf32>
    %c1_i32 = arith.constant 1 : i32
    %c0_18 = arith.constant 0 : index
    %c0_19 = arith.constant 0 : index
    %63 = vector.load %arg3[%c0_18, %c0_19] : memref<16x128xf32, #tpu.memory_space<vmem>>, vector<16x128xf32>
    %64 = arith.addf %63, %61 : vector<16x128xf32>
    %c0_20 = arith.constant 0 : index
    %c0_21 = arith.constant 0 : index
    %65 = vector.load %arg3[%c0_20, %c0_21] : memref<16x128xf32, #tpu.memory_space<vmem>>, vector<16x128xf32>
    tpu.vector_store %arg3[%c0_20, %c0_21], %64 {strides = array<i32>} : memref<16x128xf32, #tpu.memory_space<vmem>>, vector<16x128xf32>,
    %c0_22 = arith.constant 0 : index
    %c0_23 = arith.constant 0 : index
    %66 = vector.load %arg4[%c0_22, %c0_23] : memref<16x128xf32, #tpu.memory_space<vmem>>, vector<16x128xf32>
    %67 = arith.addf %66, %62 : vector<16x128xf32>
    %c0_24 = arith.constant 0 : index
    %c0_25 = arith.constant 0 : index
    %68 = vector.load %arg4[%c0_24, %c0_25] : memref<16x128xf32, #tpu.memory_space<vmem>>, vector<16x128xf32>
    tpu.vector_store %arg4[%c0_24, %c0_25], %67 {strides = array<i32>} : memref<16x128xf32, #tpu.memory_space<vmem>>, vector<16x128xf32>,
    return
  }
  func.func @transform_0(%arg0: i32) -> (i32, i32) {
    %c0_i32 = arith.constant 0 : i32
    %c0_i32_0 = arith.constant 0 : i32
    return %arg0, %c0_i32 : i32, i32
  }
  func.func @transform_1(%arg0: i32) -> (i32, i32) {
    %c0_i32 = arith.constant 0 : i32
    %c0_i32_0 = arith.constant 0 : i32
    return %arg0, %c0_i32 : i32, i32
  }
  func.func @transform_2(%arg0: i32) -> (i32, i32) {
    %c0_i32 = arith.constant 0 : i32
    %c0_i32_0 = arith.constant 0 : i32
    %c0_i32_1 = arith.constant 0 : i32
    return %c0_i32, %c0_i32_0 : i32, i32
  }
  func.func @transform_3(%arg0: i32) -> (i32, i32) {
    %c0_i32 = arith.constant 0 : i32
    %c0_i32_0 = arith.constant 0 : i32
    %c0_i32_1 = arith.constant 0 : i32
    return %c0_i32, %c0_i32_0 : i32, i32
  }
}

</mosaic_0001>

<bundles_post_ra>
// kernel: tpu_custom_call.1
= control target key start
LH: loop header
LB: loop body
LE: loop exit
PB: predicated region body
PF: predicated region fallthrough
CT: control target
= control target key end

     0   :  { %9 = vsyncpa [#allocation3], 0  ;;  %s969_s0 = inlined_call_operand.hbm [shape: f32[17,128], index: 0, kind: input, shape index: {}]   ;;  %s970_s1 = inlined_call_operand.hbm [shape: s32[17,128], index: 1, kind: input, shape index: {}]   ;;  %s971_s2 = inlined_call_operand.hbm [shape: f32[16,128], index: 2, kind: output, shape index: {0}]   ;;  %s972_s3 = inlined_call_operand.hbm [shape: f32[16,128], index: 3, kind: output, shape index: {1}]  }
   0x1   :  { %11 = vsyncpa [#allocation3 + $0x1], 0 }
   0x2   :  { %12 = vsyncpa [#allocation6], 0 }
   0x3   :  { %14 = vsyncpa [#allocation6 + $0x1], 0 }
   0x4   :  { %15 = vsyncpa [#allocation4], 0 }
   0x5   :  { %16 = vsyncpa [#allocation9], 0  ;;  %s738_s12 = smov 0   ;;  %s740_s13 = smov 0  }
   0x6   :  { %s742_s14 = smov 0   ;;  %s744_s15 = smov 0  }
   0x7 LB: > { %s757_s16 = sadd.s32 4294967295, %s704_s15   ;;  %s760_s17 = sadd.s32 1, %s704_s15   ;;  %s704_s15 = sphi %s744_s15, %s980_s15   ;;  %s700_s14 = sphi %s742_s14, %s979_s14   ;;  %s696_s13 = sphi %s740_s13, %s978_s13   ;;  %s692_s12 = sphi %s738_s12, %s977_s12  }
   0x8   : > { %s26_s18 = ssub.s32 %s704_s15, %s760_s17  ;;  %s29_s19 = sadd.s32 1, %s700_s14 }
   0x9   : > { %p27_p0 = scmp.eq.s32.totalorder %s26_s18, 0  ;;  %p36_p1 = scmp.ne.s32.totalorder %s700_s14, %s696_s13 }
   0xa   : > { %p37_p2 = scmp.eq.s32.totalorder %s704_s15, 0  ;;  %p42_p3 = scmp.ne.s32.totalorder %s696_s13, %s692_s12 }
   0xb   : > { %s770_s20 = scalar_select %p27_p0, %s700_s14, %s29_s19  }
   0xc   : > { %p772_p4 = por %p37_p2, %p36_p1  ;;  %p43_p5 = scmp.eq.s32.totalorder %s757_s16, 0 }
   0xd   : > { %p460_p7 = scmp.ge.s32.totalorder %s704_s15, 2 }
   0xe   : > { %p777_p6 = por %p43_p5, %p42_p3 }
   0xf   : > { %130 = sbr.rel (%p460_p7) target bundleno = 84 (0x54), region = 16 }
  0x14   : > { %133 = sbr.rel (!%p772_p4) target bundleno = 52 (0x34), region = 20  ;;  %s134_s23 = sand.u32 (%p772_p4), 1, %s700_s14  }
  0x15   : > { %s462_s24 = sshll.u32 (%p772_p4), %s704_s15, 1  ;;  %s461_s25 = sshll.u32 (%p772_p4), %s134_s23, 4 }
  0x16   : > { %s140_s26 = ssub.s32 (%p772_p4), 3, %s462_s24  ;;  %s789_s29 = scalar_lea.sflag (%p772_p4), [#allocation3], %s134_s23 }
  0x17   : > { %p141_p8 = scmp.lt.s32.totalorder (%p772_p4), %s140_s26, 2  ;;  %s138_s30 = scalar_lea.vmem (%p772_p4), [#allocation2], %s461_s25 }
  0x19   : > { %s982_s26 = smov (!%p141_p8, %s140_s26), 2 }
  0x1a   : > { %s786_s27 = sshll.u32 %s982_s26, 7 }
  0x1b   : > { %s145_s28 = ssub.s32 256, %s786_s27 }
  0x1c   : > { %146 = vsyncadd %s789_s29, %s145_s28  ;;  %p464_p9 = scmp.ne.s32.totalorder %s786_s27, 0  ;;  %s488_s4 = sshll.u32 %s704_s15, 8 }
  0x1d   : > { %s797_s7 = scalar_lea.hbm %s969_s0, %s488_s4  ;;  %s151_s8 = sshll.u32 %s138_s30, 4  ;;  %s799_s8 = int_to_ptr.vmem [resolvable:$true] %s151_s8 }
  0x1e   : > { %s558_s9 = scalar_lea.hbm %s797_s7, %s786_s27  ;;  %s562_s12 = scalar_lea.hbm %s969_s0, 384 }
  0x1f   : > { %p559_p10 = scmp.ne.s32.totalorder %s797_s7, %s558_s9  ;;  %p563_p13 = scmp.lt.s32.totalorder %s797_s7, %s969_s0 }
  0x20   : > { %p564_p0 = scmp.lt.s32.totalorder %s562_s12, %s558_s9 }
  0x21   : > { %p560_p11 = pnand %p559_p10, %p464_p9 }
  0x22   : > { %p565_p1 = por %p564_p0, %p563_p13 }
  0x23   : > { %p561_p12 = pneg %p560_p11 }
  0x25   : > { %p566_p2 = pnand %p565_p1, %p561_p12 }
  0x27   : > { %569 = shalt.err (!%p566_p2)
}
  0x28   : > { %s570_s23 = scalar_lea.vmem %s799_s8, %s786_s27  ;;  %s706_s24 = smov [#allocation2]  }
  0x29   : > { %p571_p3 = scmp.ne.s32.totalorder %s799_s8, %s570_s23  ;;  %s574_s25 = sshll.u32 %s706_s24, 4  ;;  %s575_s25 = int_to_ptr.vmem [resolvable:$false] %s574_s25 }
  0x2a   : > { %s576_s26 = scalar_lea.vmem %s575_s25, 512  ;;  %p577_p8 = scmp.lt.s32.totalorder %s799_s8, %s575_s25 }
  0x2b   : > { %p572_p5 = pnand %p571_p3, %p464_p9  ;;  %p578_p10 = scmp.lt.s32.totalorder %s576_s26, %s570_s23 }
  0x2d   : > { %p573_p7 = pneg %p572_p5  ;;  %p579_p11 = por %p578_p10, %p577_p8 }
  0x2f   : > { %p580_p13 = pnand %p579_p11, %p573_p7 }
  0x31   : > { %583 = shalt.err (!%p580_p13)
}
  0x32   : > { %s707_s28 = smov 128   ;;  %s708_s30 = smov 8  }
  0x33   : > { %157 = dma.hbm_to_vmem [thread:$0]  (%p464_p9), %s797_s7, %s786_s27, %s799_s8, %s789_s29, %s707_s28, %s707_s28, %s708_s30  }
  0x34 PF: > { %160 = sbr.rel (!%p772_p4) target bundleno = 84 (0x54), region = 24  ;;  %s161_s4 = sand.u32 (%p772_p4), 1, %s700_s14  }
  0x35   : > { %s469_s5 = sshll.u32 (%p772_p4), %s704_s15, 1  ;;  %s468_s6 = sshll.u32 (%p772_p4), %s161_s4, 4 }
  0x36   : > { %s167_s9 = ssub.s32 (%p772_p4), 3, %s469_s5  ;;  %s832_s12 = scalar_lea.sflag (%p772_p4), [#allocation6], %s161_s4 }
  0x37   : > { %p168_p12 = scmp.lt.s32.totalorder (%p772_p4), %s167_s9, 2  ;;  %s165_s27 = scalar_lea.vmem (%p772_p4), [#allocation5], %s468_s6 }
  0x39   : > { %s984_s9 = smov (!%p168_p12, %s167_s9), 2 }
  0x3a   : > { %s829_s10 = sshll.u32 %s984_s9, 7 }
  0x3b   : > { %s172_s11 = ssub.s32 256, %s829_s10 }
  0x3c   : > { %173 = vsyncadd %s832_s12, %s172_s11  ;;  %p471_p4 = scmp.ne.s32.totalorder %s829_s10, 0  ;;  %s489_s21 = sshll.u32 %s704_s15, 8 }
  0x3d   : > { %s840_s8 = scalar_lea.hbm %s970_s1, %s489_s21  ;;  %s178_s18 = sshll.u32 %s165_s27, 4  ;;  %s842_s18 = int_to_ptr.vmem [resolvable:$true] %s178_s18 }
  0x3e   : > { %s584_s19 = scalar_lea.hbm %s840_s8, %s829_s10  ;;  %s588_s25 = scalar_lea.hbm %s970_s1, 384 }
  0x3f   : > { %p585_p9 = scmp.ne.s32.totalorder %s840_s8, %s584_s19  ;;  %p589_p2 = scmp.lt.s32.totalorder %s840_s8, %s970_s1 }
  0x40   : > { %p590_p3 = scmp.lt.s32.totalorder %s588_s25, %s584_s19 }
  0x41   : > { %p586_p0 = pnand %p585_p9, %p471_p4 }
  0x42   : > { %p591_p5 = por %p590_p3, %p589_p2 }
  0x43   : > { %p587_p1 = pneg %p586_p0 }
  0x45   : > { %p592_p7 = pnand %p591_p5, %p587_p1 }
  0x47   : > { %595 = shalt.err (!%p592_p7)
}
  0x48   : > { %s596_s30 = scalar_lea.vmem %s842_s18, %s829_s10  ;;  %s709_s4 = smov [#allocation5]  }
  0x49   : > { %p597_p8 = scmp.ne.s32.totalorder %s842_s18, %s596_s30  ;;  %s600_s5 = sshll.u32 %s709_s4, 4  ;;  %s601_s5 = int_to_ptr.vmem [resolvable:$false] %s600_s5 }
  0x4a   : > { %s602_s6 = scalar_lea.vmem %s601_s5, 512  ;;  %p603_p13 = scmp.lt.s32.totalorder %s842_s18, %s601_s5 }
  0x4b   : > { %p598_p10 = pnand %p597_p8, %p471_p4  ;;  %p604_p12 = scmp.lt.s32.totalorder %s602_s6, %s596_s30 }
  0x4d   : > { %p599_p11 = pneg %p598_p10  ;;  %p605_p9 = por %p604_p12, %p603_p13 }
  0x4f   : > { %p606_p0 = pnand %p605_p9, %p599_p11 }
  0x51   : > { %609 = shalt.err (!%p606_p0)
}
  0x52   : > { %s710_s9 = smov 128   ;;  %s711_s11 = smov 8  }
  0x53   : > { %184 = dma.hbm_to_vmem [thread:$0]  (%p471_p4), %s840_s8, %s829_s10, %s842_s18, %s832_s12, %s710_s9, %s710_s9, %s711_s11  }
  0x54 PF: > { %p475_p1 = scmp.ge.s32.totalorder %s704_s15, 1  ;;  %p186_p2 = scmp.lt.s32.totalorder %s704_s15, 3 }
  0x56   : > { %p187_p3 = pnand %p475_p1, %p186_p2 }
  0x57   : > { %s192_s27 = sand.u32 (!%p187_p3), 1, %s696_s13  }
  0x58   : > { %190 = sbr.rel (%p187_p3) target bundleno = 178 (0xb2), region = 28  ;;  %s476_s21 = sshll.u32 (!%p187_p3), %s192_s27, 4 }
  0x59   : > { %s193_s29 = scalar_lea.sflag (!%p187_p3), [#allocation3], %s192_s27  ;;  %s196_s7 = scalar_lea.vmem (!%p187_p3), [#allocation2], %s476_s21 }
  0x5d   : > { %675 = dma.done.wait (%p777_p6), %s193_s29, 256  }
  0x5e   : > { %677 = vsyncadd (%p777_p6), %s193_s29, 4294967040  ;;  %s202_s10 = scalar_lea.sflag [#allocation6], %s192_s27  ;;  %s205_s12 = scalar_lea.vmem [#allocation5], %s476_s21 }
  0x5f   : > { %679 = dma.done.wait (%p777_p6), %s202_s10, 256  }
  0x60   : > { %681 = vsyncadd (%p777_p6), %s202_s10, 4294967040  ;;  %p478_p4 = scmp.ne.s32.totalorder %s757_s16, 0 }
  0x62   : > { %241 = sbr.rel (%p478_p4) target bundleno = 106 (0x6a), region = 40 }
  0x67   : > { %v712_v0 = vmov 0.0  }
  0x68   : > { %242 = vst [vmem:[#allocation7] sm:$0xff] %v712_v0  ;;  %243 = vst [vmem:[#allocation7 + $0x8] sm:$0xff] %v712_v0 }
  0x69   : > { %244 = vst [vmem:[#allocation8] sm:$0xff] %v712_v0  ;;  %245 = vst [vmem:[#allocation8 + $0x8] sm:$0xff] %v712_v0 }
  0x6a PF: > { %s479_s15 = sshll.u32 %s757_s16, 4  ;;  %v247_v1 = vlaneseq  ;;  %v250_v4 = vld [vmem:[%s196_s7] sm:$0xff]  ;;  %v251_v10 = vld [vmem:[%s196_s7 + $0x8] sm:$0xff]  ;;  %s713_s22 = smov [#allocation8]   ;;  %v714_v22 = vmov 0.0  }
  0x6b   : > { %v255_v2 = vstv %s479_s15  ;;  %v252_v7 = vld [vmem:[%s205_s12] sm:$0xff]  ;;  %v253_v11 = vld [vmem:[%s205_s12 + $0x8] sm:$0xff]  ;;  %s371_s8 = sshll.u32 %s713_s22, 4  ;;  %p500_p6 = scmp.eq.s32.totalorder %s757_s16, 1  ;;  %s372_s8 = int_to_ptr.vmem [resolvable:$true] %s371_s8 }
  0x6c   : > { %v248_v3 = vshrl.u32 %v247_v1, 7  ;;  %s610_s18 = scalar_lea.vmem %s372_s8, 256  ;;  %p617_p10 = scmp.lt.s32.totalorder %s372_s8, %s372_s8 }
  0x6d   : > { %p611_p5 = scmp.ne.s32.totalorder %s372_s8, %s610_s18  ;;  %p618_p11 = scmp.lt.s32.totalorder %s610_s18, %s610_s18 }
  0x6e   : > { %v256_v5 = vadd.s32 %v255_v2, %v248_v3  ;;  %v249_v6 = vadd.s32 8, %v248_v3 }
  0x6f   : > { %p612_p7 = pnand %p611_p5, %p500_p6  ;;  %p619_p13 = por %p618_p11, %p617_p10 }
  0x70   : > { %vm258_vm0 = vcmp.lt.s32.totalorder %v256_v5, 17  ;;  %v257_v8 = vadd.s32 %v255_v2, %v249_v6  ;;  %v346_v18 = vld [vmem:[#allocation8] sm:$0xff]  ;;  %v347_v20 = vld [vmem:[#allocation8 + $0x8] sm:$0xff] }
  0x71   : > { %v881_v9 = vsel %vm258_vm0, %v250_v4, 0.0  ;;  %v884_v13 = vsel %vm258_vm0, %v252_v7, 4294967295  ;;  %p613_p8 = pneg %p612_p7 }
  0x72   : > { %v276_v12 = vand.u32 2147483647, %v881_v9  ;;  %vm259_vm1 = vcmp.lt.s32.totalorder %v257_v8, 17  ;;  %vm264_vm2 = vcmp.gt.s32.totalorder %v884_v13, 0 }
  0x73   : > { %v886_v15 = vsel %vm259_vm1, %v251_v10, 0.0  ;;  %v888_v16 = vsel %vm259_vm1, %v253_v11, 4294967295  ;;  %v480_v23 = vsel %vm264_vm2, 1.0, %v714_v22  ;;  %p620_p12 = pnand %p619_p13, %p613_p8 }
  0x74   : > { %v278_v14 = vsub.f32 0.0, %v276_v12  ;;  %v277_v17 = vand.u32 2147483647, %v886_v15  ;;  %vm265_vm3 = vcmp.gt.s32.totalorder %v888_v16, 0  ;;  %v348_v24 = vadd.f32 %v480_v23, %v346_v18 }
  0x75   : > { %v481_v25 = vsel %vm265_vm3, 1.0, %v714_v22 }
  0x76   : > { %v280_v19 = vmul.f32 1.442695, %v278_v14  ;;  %v279_v21 = vsub.f32 0.0, %v277_v17  ;;  %v349_v27 = vadd.f32 %v481_v25, %v347_v20  ;;  %350 = vst [vmem:[#allocation8] sm:$0xff] %v348_v24 }
  0x78   : > { %546 = vpow2.f32 %v280_v19  ;;  %v282_v26 = vmul.f32 1.442695, %v279_v21  ;;  %351 = vst [vmem:[#allocation8 + $0x8] sm:$0xff] %v349_v27 }
  0x7a   : > { %548 = vpow2.f32 %v282_v26 }
  0x7b   : > { %623 = shalt.err (!%p620_p12)
}
  0x7c   : > { %s715_s19 = smov 128   ;;  %s716_s23 = smov 8   ;;  %vm294_vm4 = vcmp.ge.f32.partialorder %v881_v9, 0.0  ;;  %v304_v38 = vmax.f32 %v881_v9, 0.0  ;;  %vm266_vm5 = vcmp.ge.s32.totalorder %v884_v13, 0  ;;  %v306_v42 = vsel %vm264_vm2, %v881_v9, 0.0 }
  0x7d   : > { %495 = dma.vmem_to_hbm [thread:$0]  (%p500_p6), %s372_s8, 256, %s972_s3, [#allocation9], %s715_s19, %s715_s19, %s716_s23   ;;  %vm295_vm6 = vcmp.ge.f32.partialorder %v886_v15, 0.0  ;;  %v272_v51 = vsel %vm266_vm5, 0.75, %v714_v22  ;;  %vm267_vm8 = vcmp.ge.s32.totalorder %v888_v16, 0  ;;  %v305_v57 = vmax.f32 %v886_v15, 0.0 }
  0x7e   : > { %v308_v52 = vsub.f32 %v304_v38, %v306_v42  ;;  %v307_v59 = vsel %vm265_vm3, %v886_v15, 0.0  ;;  %v274_v1 = vsel %vm264_vm2, 0.25, %v272_v51  ;;  %v273_v3 = vsel %vm267_vm8, 0.75, %v714_v22  ;;  %v340_v12 = vld [vmem:[#allocation7] sm:$0xff]  ;;  %v341_v19 = vld [vmem:[#allocation7 + $0x8] sm:$0xff]  ;;  %s717_s26 = smov [#allocation7]  }
  0x7f   : > { %v309_v4 = vsub.f32 %v305_v57, %v307_v59  ;;  %v275_v10 = vsel %vm265_vm3, 0.25, %v273_v3  ;;  %s358_s28 = sshll.u32 %s717_s26, 4  ;;  %s359_s28 = int_to_ptr.vmem [resolvable:$true] %s358_s28 }
  0x80   : > { %s634_s30 = scalar_lea.vmem %s359_s28, 256  ;;  %p641_p2 = scmp.lt.s32.totalorder %s359_s28, %s359_s28 }
  0x81   : > { %p635_p9 = scmp.ne.s32.totalorder %s359_s28, %s634_s30  ;;  %p642_p3 = scmp.lt.s32.totalorder %s634_s30, %s634_s30 }
  0x83   : > { %p636_p0 = pnand %p635_p9, %p500_p6  ;;  %p643_p4 = por %p642_p3, %p641_p2 }
  0x85   : > { %v547_v28 = vpop.eup %546  ;;  %p637_p1 = pneg %p636_p0 }
  0x86   : > { %v284_v29 = vadd.f32 1.0, %v547_v28  ;;  %v313_v32 = vmul.f32 -0.5, %v547_v28  ;;  %v316_v39 = vand.u32 2147483647, %v547_v28  ;;  %v296_v43 = vsel %vm294_vm4, 1.0, %v547_v28 }
  0x87   : > { %v549_v30 = vpop.eup %548  ;;  %p644_p5 = pnand %p643_p4, %p637_p1 }
  0x88   : > { %550 = vrcp.f32 %v284_v29  ;;  %v285_v31 = vadd.f32 1.0, %v549_v30  ;;  %v322_v34 = vmul.f32 -0.5, %v549_v30  ;;  %v314_v36 = vadd.f32 1.0, %v313_v32 }
  0x89   : > { %552 = vlog2.f32 %v284_v29  ;;  %v325_v50 = vand.u32 2147483647, %v549_v30  ;;  %vm918_vm7 = vcmp.lt.f32.partialorder %v316_v39, 0.0004427343  ;;  %v297_v56 = vsel %vm295_vm6, 1.0, %v549_v30 }
  0x8a   : > { %554 = vrcp.f32 %v285_v31  ;;  %v323_v45 = vadd.f32 1.0, %v322_v34  ;;  %v315_v49 = vmul.f32 %v547_v28, %v314_v36 }
  0x8b   : > { %556 = vlog2.f32 %v285_v31  ;;  %vm326_vm9 = vcmp.lt.f32.partialorder %v325_v50, 0.0004427343 }
  0x8c   : > { %v324_v61 = vmul.f32 %v549_v30, %v323_v45 }
  0x95   : > { %v551_v33 = vpop.eup %550 }
  0x96   : > { %v288_v35 = vmul.f32 %v551_v33, %v284_v29  ;;  %v553_v37 = vpop.eup %552 }
  0x97   : > { %v555_v40 = vpop.eup %554  ;;  %v312_v48 = vmul.f32 0.6931472, %v553_v37 }
  0x98   : > { %v290_v41 = vsub.f32 2.0, %v288_v35  ;;  %v289_v44 = vmul.f32 %v555_v40, %v285_v31  ;;  %v557_v46 = vpop.eup %556 }
  0x99   : > { %v321_v60 = vmul.f32 0.6931472, %v557_v46  ;;  %v318_v63 = vsel %vm918_vm7, %v315_v49, %v312_v48 }
  0x9a   : > { %v292_v47 = vmul.f32 %v551_v33, %v290_v41  ;;  %v291_v54 = vsub.f32 2.0, %v289_v44  ;;  %v328_v5 = vadd.f32 %v318_v63, %v308_v52 }
  0x9b   : > { %v327_v8 = vsel %vm326_vm9, %v324_v61, %v321_v60 }
  0x9c   : > { %v298_v55 = vmul.f32 %v296_v43, %v292_v47  ;;  %v293_v58 = vmul.f32 %v555_v40, %v291_v54  ;;  %v329_v14 = vadd.f32 %v327_v8, %v309_v4 }
  0x9e   : > { %v300_v62 = vsub.f32 1.0, %v298_v55  ;;  %v299_v0 = vmul.f32 %v297_v56, %v293_v58 }
  0xa0   : > { %v302_v2 = vsel %vm264_vm2, %v300_v62, %v298_v55  ;;  %v301_v7 = vsub.f32 1.0, %v299_v0 }
  0xa1   : > { %v330_v6 = vmul.f32 %v302_v2, %v302_v2 }
  0xa2   : > { %v303_v11 = vsel %vm265_vm3, %v301_v7, %v299_v0 }
  0xa3   : > { %v332_v9 = vmul.f32 %v330_v6, %v274_v1  ;;  %v331_v15 = vmul.f32 %v303_v11, %v303_v11 }
  0xa5   : > { %v334_v13 = vmul.f32 %v332_v9, %v328_v5  ;;  %v333_v17 = vmul.f32 %v331_v15, %v275_v10 }
  0xa7   : > { %v342_v18 = vadd.f32 %v340_v12, %v334_v13  ;;  %v335_v20 = vmul.f32 %v333_v17, %v329_v14 }
  0xa9   : > { %344 = vst [vmem:[#allocation7] sm:$0xff] %v342_v18  ;;  %v343_v21 = vadd.f32 %v341_v19, %v335_v20 }
  0xab   : > { %345 = vst [vmem:[#allocation7 + $0x8] sm:$0xff] %v343_v21 }
  0xac   : > { %647 = shalt.err (!%p644_p5)
}
  0xad   : > { %493 = dma.vmem_to_hbm [thread:$0]  (%p500_p6), %s359_s28, 256, %s971_s2, [#allocation4], %s715_s19, %s715_s19, %s716_s23  }
  0xae   : > { %683 = dma.done.wait (%p500_p6), [#allocation4], 256  }
  0xaf   : > { %685 = vsyncadd (%p500_p6), [#allocation4], 4294967040 }
  0xb0   : > { %687 = dma.done.wait (%p500_p6), [#allocation9], 256  }
  0xb1   : > { %689 = vsyncadd (%p500_p6), [#allocation9], 4294967040 }
  0xb2 PF: > { %p19_p7 = scmp.ge.s32.totalorder %s760_s17, 4   ;;  %s977_s12 = smov %s696_s13 }
  0xb3   : > { %s978_s13 = smov %s700_s14  ;;  %s979_s14 = smov %s770_s20 }
  0xb4   : > { %s980_s15 = smov %s760_s17  ;;  %21 = sbr.rel (!%p19_p7) target bundleno = 7 (0x7), region = 90 }
  0xb9   :  { %391 = vsyncpa [#allocation3], 1 }
  0xba   :  { %393 = vsyncpa [#allocation3 + $0x1], 1 }
  0xbb   :  { %394 = vsyncpa [#allocation6], 1 }
  0xbc   :  { %396 = vsyncpa [#allocation6 + $0x1], 1 }
  0xbd   :  { %397 = vsyncpa [#allocation4], 1 }
  0xbe   :  { %399 = vsyncpa [#allocation4 + $0x1], 1 }
  0xbf   :  { %400 = vsyncpa [#allocation9], 1 }

</bundles_post_ra>
